<compile_context>
chip_gen: v7x
topology: tpu7x:2x2x1
jax: 0.10.0
libtpu: 0.0.40
codegen_flags: <defaults>
</compile_context>

<pallas_src>
import jax
import jax.numpy as jnp
from jax import lax
from jax.experimental import pallas as pl
from jax.experimental.pallas import tpu as pltpu

IN_DIM = 256
HID_DIM = 50
OUT_DIM = 1


def protoclr_dis_kernel(x_ref, w1_ref, b1_ref, w2_ref, b2_ref, o_ref):
    # x_ref:  (tb, 256) caller dtype   w1_ref: (256, 50) bf16
    # b1_ref: (1, 50) f32   w2_ref: (1, 50) f32   b2_ref: (1, 1) f32
    # o_ref:  (1, tb) f32   (lane-dense output row per batch tile)

    # Cast x to bf16 on the VPU (hidden under the x DMA, no-op for bf16
    # callers), fc1 on the MXU with f32 accumulation, bias + relu in f32.
    xb = x_ref[...].astype(jnp.bfloat16)
    h = jnp.dot(xb, w1_ref[...], preferred_element_type=jnp.float32)   # (tb, 50)
    h = jnp.maximum(h + b1_ref[...], 0.0)

    # dropout: identity (eval mode).

    # fc2 (output width 1) as w2 (1,50) contracted against h's hidden dim,
    # i.e. w2 @ h^T -> (1, tb): lane-dense result, so the store is an
    # unmasked vst and the sigmoid runs on full vregs.  The implied transpose
    # rides the otherwise-idle XLU/MXU while the x DMA is the bottleneck.
    y = lax.dot_general(
        w2_ref[...], h,
        dimension_numbers=(((1,), (1,)), ((), ())),
        preferred_element_type=jnp.float32,
    ) + b2_ref[...]                                                     # (1, tb)

    # Exact sigmoid: exp on the EUP, exact reciprocal/divide (the approx
    # reciprocal was the source of the >1e-3 mismatch).
    o_ref[...] = (1.0 / (1.0 + jnp.exp(-y))).astype(o_ref.dtype)


def _round_up(n, m):
    return ((n + m - 1) // m) * m


def _pick_tile(batch):
    """Batch-tile heuristic.

    The kernel is purely x-bandwidth-bound, so tiles exist only to amortize
    the ~0.35us/step pipeline overhead.  Small/medium batches get a single
    tile (splitting only helps on v7x's two TensorCores; on v5e/v6e it is pure
    overhead).  Large batches use 2048-row tiles (a multiple of the 256-row
    MXU dimension on v6e/v7x); 2048x256 f32 double-buffered is 4 MiB, far
    under the scoped VMEM limit on all three generations, and the lane-dense
    output keeps the output buffers negligible.
    """
    if batch <= 2048:
        return max(8, _round_up(batch, 8))
    return 2048


def protoclr_dis_forward(x, w1, b1, w2, b2, *, tb=None):
    """x: (B, 256) -> (B, 1) float32.

    x is streamed in its native dtype and cast to bf16 inside the kernel; w1
    is streamed as bf16; biases, w2, the relu/fc2 epilogue and the sigmoid
    stay in f32.
    """
    B, D = x.shape
    assert D == IN_DIM, D
    if tb is None:
        tb = _pick_tile(B)
    tb = max(8, _round_up(min(tb, 2048), 8))
    num_tiles = pl.cdiv(B, tb)          # boundary block handled by Pallas

    w1b = w1.astype(jnp.bfloat16)
    b1f = b1.reshape(1, HID_DIM).astype(jnp.float32)
    w2f = w2.reshape(1, HID_DIM).astype(jnp.float32)
    b2f = b2.reshape(1, OUT_DIM).astype(jnp.float32)

    rows = num_tiles * tb               # rows actually streamed (incl. pad)
    x_bytes = rows * IN_DIM * jnp.dtype(x.dtype).itemsize
    cost = pl.CostEstimate(
        flops=2 * rows * IN_DIM * HID_DIM + 5 * rows * HID_DIM,
        transcendentals=2 * rows,
        bytes_accessed=(x_bytes
                        + IN_DIM * HID_DIM * 2       # w1 (bf16)
                        + (2 * HID_DIM + 1) * 4      # b1, w2, b2 (f32)
                        + rows * 4),                 # output (f32)
    )

    out = pl.pallas_call(
        protoclr_dis_kernel,
        out_shape=jax.ShapeDtypeStruct((num_tiles, tb), jnp.float32),
        grid_spec=pltpu.PrefetchScalarGridSpec(
            num_scalar_prefetch=0,
            grid=(num_tiles,),
            in_specs=[
                pl.BlockSpec((tb, IN_DIM), lambda i: (i, 0)),        # x tile
                # Constant index_map operands: Pallas keeps revisited blocks
                # resident, so w1/b1/w2/b2 are fetched once, not per step.
                pl.BlockSpec((IN_DIM, HID_DIM), lambda i: (0, 0)),   # w1
                pl.BlockSpec((1, HID_DIM), lambda i: (0, 0)),        # b1
                pl.BlockSpec((1, HID_DIM), lambda i: (0, 0)),        # w2 row
                pl.BlockSpec((1, OUT_DIM), lambda i: (0, 0)),        # b2
            ],
            # Lane-dense output: one (1, tb) row per batch tile.
            out_specs=pl.BlockSpec((1, tb), lambda i: (i, 0)),
        ),
        compiler_params=pltpu.CompilerParams(
            # "parallel" lets a multi-tile grid shard across v7x's 2 TCs;
            # harmless (grid is a plain loop) on v5e/v6e.
            dimension_semantics=("parallel",),
        ),
        cost_estimate=cost,
    )(x, w1b, b1f, w2f, b2f)

    # (num_tiles, tb) row-major == flat batch order; drop padded rows.
    return out.reshape(num_tiles * tb)[:B].reshape(B, OUT_DIM)


def reference_forward_f32(x, w1, b1, w2, b2):
    h = jnp.maximum(x @ w1 + b1.reshape(1, HID_DIM), 0.0)
    y = h @ w2.reshape(1, HID_DIM).T + b2.reshape(1, OUT_DIM)
    return jax.nn.sigmoid(y)


def reference_forward_bf16(x, w1, b1, w2, b2):
    """Reference matching the kernel's mixed precision (bf16 fc1, f32 rest)."""
    h = jnp.dot(x.astype(jnp.bfloat16), w1.astype(jnp.bfloat16),
                preferred_element_type=jnp.float32) + b1.reshape(1, HID_DIM)
    h = jnp.maximum(h, 0.0)
    y = jnp.sum(h * w2.reshape(1, HID_DIM), axis=-1, keepdims=True)
    y = y + b2.reshape(1, OUT_DIM)
    return jax.nn.sigmoid(y)


def init_params(key):
    """Deterministic init mimicking nn.Linear (uniform(-1/sqrt(fan_in), ...))."""
    k1, k2, k3, k4 = jax.random.split(key, 4)
    lim1 = 1.0 / jnp.sqrt(IN_DIM)
    lim2 = 1.0 / jnp.sqrt(HID_DIM)
    w1 = jax.random.uniform(k1, (IN_DIM, HID_DIM), jnp.float32, -lim1, lim1)
    b1 = jax.random.uniform(k2, (1, HID_DIM), jnp.float32, -lim1, lim1)
    w2 = jax.random.uniform(k3, (1, HID_DIM), jnp.float32, -lim2, lim2)
    b2 = jax.random.uniform(k4, (1, OUT_DIM), jnp.float32, -lim2, lim2)
    return w1, b1, w2, b2


def _check(x, params):
    out = jax.block_until_ready(protoclr_dis_forward(x, *params))
    assert out.shape == (x.shape[0], OUT_DIM), out.shape
    # Tight check against the precision-matched (bf16 fc1, f32 rest, exact
    # sigmoid) reference.
    ref_mixed = reference_forward_bf16(x, *params)
    err_mixed = jnp.max(jnp.abs(out - ref_mixed))
    assert err_mixed < 1e-3, f"mixed-precision mismatch {err_mixed}"
    # Loose sanity check against the pure-f32 reference (bf16 rounding on fc1).
    ref_f32 = reference_forward_f32(x, *params)
    err_f32 = jnp.max(jnp.abs(out - ref_f32))
    assert err_f32 < 2e-2, f"f32 sanity mismatch {err_f32}"


if __name__ == "__main__":
    key = jax.random.PRNGKey(0)
    k_x1, k_x2, k_p = jax.random.split(key, 3)
    params = init_params(k_p)

    # Small batch (single tile, exact block).
    x_small = jax.random.normal(k_x1, (8, IN_DIM), jnp.float32)
    _check(x_small, params)

    # Larger batch (exercises the tile heuristic and lane-dense output path).
    x_ragged = jax.random.normal(k_x2, (200, IN_DIM), jnp.float32)
    _check(x_ragged, params)

    print("KERNEL_OK")
</pallas_src>

<mosaic_0001>
module attributes {stable_mosaic.version = 11 : i64} {
  func.func @protoclr_dis_kernel(%arg0: i32, %arg1: memref<8x256xf32, #tpu.memory_space<vmem>>, %arg2: memref<256x50xbf16, #tpu.memory_space<vmem>>, %arg3: memref<1x50xf32, #tpu.memory_space<vmem>>, %arg4: memref<1x50xf32, #tpu.memory_space<vmem>>, %arg5: memref<1x1xf32, #tpu.memory_space<vmem>>, %arg6: memref<1x8xf32, #tpu.memory_space<vmem>>) attributes {dimension_semantics = [#tpu.dimension_semantics<parallel>], iteration_bounds = array<i64: 1>, scalar_prefetch = 0 : i64, scratch_operands = 0 : i64, tpu.core_type = #tpu.core_type<tc>, window_params = [{transform_indices = @transform_0, window_bounds = array<i64: 8, 256>}, {pipeline_mode = #tpu.pipeline_mode<synchronous>, transform_indices = @transform_1, window_bounds = array<i64: 256, 50>}, {pipeline_mode = #tpu.pipeline_mode<synchronous>, transform_indices = @transform_2, window_bounds = array<i64: 1, 50>}, {pipeline_mode = #tpu.pipeline_mode<synchronous>, transform_indices = @transform_3, window_bounds = array<i64: 1, 50>}, {pipeline_mode = #tpu.pipeline_mode<synchronous>, transform_indices = @transform_4, window_bounds = array<i64: 1, 1>}, {transform_indices = @transform_5, window_bounds = array<i64: 1, 8>}]} {
    %c0 = arith.constant 0 : index
    %c0_0 = arith.constant 0 : index
    %0 = vector.load %arg1[%c0, %c0_0] : memref<8x256xf32, #tpu.memory_space<vmem>>, vector<8x256xf32>
    %1 = arith.truncf %0 : vector<8x256xf32> to vector<8x256xbf16>
    %c0_1 = arith.constant 0 : index
    %c0_2 = arith.constant 0 : index
    %2 = vector.load %arg2[%c0_1, %c0_2] : memref<256x50xbf16, #tpu.memory_space<vmem>>, vector<256x50xbf16>
    %cst = arith.constant dense<0.000000e+00> : vector<8x50xf32>
    %3 = tpu.matmul %1, %2, %cst {dimension_numbers = #tpu.dot_dimension_numbers<[1], [0], [0], [1], [0, 0, 1, 1], [], []>} : vector<8x256xbf16>, vector<256x50xbf16>, vector<8x50xf32> -> vector<8x50xf32>
    %c0_3 = arith.constant 0 : index
    %c0_4 = arith.constant 0 : index
    %4 = vector.load %arg3[%c0_3, %c0_4] : memref<1x50xf32, #tpu.memory_space<vmem>>, vector<1x50xf32>
    %5 = vector.broadcast %4 : vector<1x50xf32> to vector<8x50xf32>
    %6 = arith.addf %3, %5 : vector<8x50xf32>
    %cst_5 = arith.constant 0.000000e+00 : f32
    %7 = vector.broadcast %cst_5 : f32 to vector<8x50xf32>
    %8 = arith.maximumf %6, %7 : vector<8x50xf32>
    %c0_6 = arith.constant 0 : index
    %c0_7 = arith.constant 0 : index
    %9 = vector.load %arg4[%c0_6, %c0_7] : memref<1x50xf32, #tpu.memory_space<vmem>>, vector<1x50xf32>
    %cst_8 = arith.constant dense<0.000000e+00> : vector<1x8xf32>
    %10 = tpu.matmul %9, %8, %cst_8 {dimension_numbers = #tpu.dot_dimension_numbers<[1], [1], [0], [0], [0, 0, 1, 0], [], []>} : vector<1x50xf32>, vector<8x50xf32>, vector<1x8xf32> -> vector<1x8xf32>
    %c0_9 = arith.constant 0 : index
    %c0_10 = arith.constant 0 : index
    %11 = vector.load %arg5[%c0_9, %c0_10] : memref<1x1xf32, #tpu.memory_space<vmem>>, vector<1x1xf32>
    %12 = vector.broadcast %11 : vector<1x1xf32> to vector<1x8xf32>
    %13 = arith.addf %10, %12 : vector<1x8xf32>
    %cst_11 = arith.constant 0.000000e+00 : f32
    %14 = vector.broadcast %cst_11 : f32 to vector<1x8xf32>
    %15 = arith.subf %14, %13 : vector<1x8xf32>
    %16 = math.exp %15 : vector<1x8xf32>
    %cst_12 = arith.constant 1.000000e+00 : f32
    %17 = vector.broadcast %cst_12 : f32 to vector<1x8xf32>
    %18 = arith.addf %17, %16 : vector<1x8xf32>
    %cst_13 = arith.constant 1.000000e+00 : f32
    %19 = vector.broadcast %cst_13 : f32 to vector<1x8xf32>
    %20 = arith.divf %19, %18 : vector<1x8xf32>
    %c0_14 = arith.constant 0 : index
    %c0_15 = arith.constant 0 : index
    %21 = vector.load %arg6[%c0_14, %c0_15] : memref<1x8xf32, #tpu.memory_space<vmem>>, vector<1x8xf32>
    tpu.vector_store %arg6[%c0_14, %c0_15], %20 {strides = array<i32>} : memref<1x8xf32, #tpu.memory_space<vmem>>, vector<1x8xf32>,
    return
  }
  func.func @transform_0(%arg0: i32) -> (i32, i32) {
    %c0_i32 = arith.constant 0 : i32
    %c0_i32_0 = arith.constant 0 : i32
    return %arg0, %c0_i32 : i32, i32
  }
  func.func @transform_1(%arg0: i32) -> (i32, i32) {
    %c0_i32 = arith.constant 0 : i32
    %c0_i32_0 = arith.constant 0 : i32
    %c0_i32_1 = arith.constant 0 : i32
    return %c0_i32, %c0_i32_0 : i32, i32
  }
  func.func @transform_2(%arg0: i32) -> (i32, i32) {
    %c0_i32 = arith.constant 0 : i32
    %c0_i32_0 = arith.constant 0 : i32
    %c0_i32_1 = arith.constant 0 : i32
    return %c0_i32, %c0_i32_0 : i32, i32
  }
  func.func @transform_3(%arg0: i32) -> (i32, i32) {
    %c0_i32 = arith.constant 0 : i32
    %c0_i32_0 = arith.constant 0 : i32
    %c0_i32_1 = arith.constant 0 : i32
    return %c0_i32, %c0_i32_0 : i32, i32
  }
  func.func @transform_4(%arg0: i32) -> (i32, i32) {
    %c0_i32 = arith.constant 0 : i32
    %c0_i32_0 = arith.constant 0 : i32
    %c0_i32_1 = arith.constant 0 : i32
    return %c0_i32, %c0_i32_0 : i32, i32
  }
  func.func @transform_5(%arg0: i32) -> (i32, i32) {
    %c0_i32 = arith.constant 0 : i32
    %c0_i32_0 = arith.constant 0 : i32
    return %arg0, %c0_i32 : i32, i32
  }
}

</mosaic_0001>

<bundles_post_ra>
// kernel: tpu_custom_call.1
= control target key start
LH: loop header
LB: loop body
LE: loop exit
PB: predicated region body
PF: predicated region fallthrough
CT: control target
= control target key end

     0   :  { %s520_s0 = inlined_call_operand.vmem [shape: f32[8,256], index: 0, kind: input, shape index: {}]   ;;  %s521_s1 = inlined_call_operand.vmem [shape: bf16[256,50], index: 1, kind: input, shape index: {}]   ;;  %s522_s2 = inlined_call_operand.vmem [shape: f32[1,50], index: 2, kind: input, shape index: {}]   ;;  %s523_s3 = inlined_call_operand.vmem [shape: f32[1,50], index: 3, kind: input, shape index: {}]   ;;  %s524_s4 = inlined_call_operand.<no memory space> [shape: f32[1,1], index: 4, kind: input, shape index: {}]   ;;  %s525_s5 = inlined_call_operand.hbm [shape: f32[1,8], index: 5, kind: output, shape index: {}]  }
   0x1   :  { %v10_v0 = vstv %s524_s4 }
   0x2   :  { %11 = vst [vmem:[#allocation2] sm:$0x1] %v10_v0 }
   0x3   :  { %v367_v1 = vld [vmem:[%s521_s1 + $0x40] sm:$0xff]   ;;  %v369_v3 = vld [vmem:[%s521_s1 + $0x48] sm:$0xff]   ;;  %v371_v5 = vld [vmem:[%s521_s1 + $0x50] sm:$0xff]  }
   0x4   :  { %v368_v2 = vld [vmem:[%s521_s1] sm:$0xff]   ;;  %333 = vmatprep.subr.bf16.mxu0 %v367_v1  ;;  %v370_v4 = vld [vmem:[%s521_s1 + $0x8] sm:$0xff]   ;;  %v372_v6 = vld [vmem:[%s521_s1 + $0x10] sm:$0xff]  }
   0x5   :  { %334 = vmatpush3.bf16.msra.mxu0 %v368_v2  ;;  %v373_v7 = vld [vmem:[%s521_s1 + $0x58] sm:$0xff]   ;;  %v375_v9 = vld [vmem:[%s521_s1 + $0x60] sm:$0xff]   ;;  %v377_v11 = vld [vmem:[%s521_s1 + $0x68] sm:$0xff]  }
   0x6   :  { %335 = vmatprep.subr.bf16.mxu0 %v369_v3  ;;  %v374_v8 = vld [vmem:[%s521_s1 + $0x18] sm:$0xff]   ;;  %v376_v10 = vld [vmem:[%s521_s1 + $0x20] sm:$0xff]   ;;  %v25_v12 = vld [vmem:[%s520_s0 + $0x8] sm:$0xff] }
   0x9   :  { %336 = vmatpush3.bf16.msra.mxu0 %v370_v4 }
   0xa   :  { %337 = vmatprep.subr.bf16.mxu0 %v371_v5 }
   0xd   :  { %338 = vmatpush3.bf16.msra.mxu0 %v372_v6 }
   0xe   :  { %339 = vmatprep.subr.bf16.mxu0 %v373_v7 }
  0x11   :  { %340 = vmatpush3.bf16.msra.mxu0 %v374_v8 }
  0x12   :  { %341 = vmatprep.subr.bf16.mxu0 %v375_v9 }
  0x13   :  { %12 = vsyncpa [#allocation4], 0  ;;  %v27_v13 = vpack.c.bf16 %v25_v12, %v25_v12  ;;  %v378_v14 = vld [vmem:[%s521_s1 + $0x28] sm:$0xff]   ;;  %v379_v15 = vld [vmem:[%s521_s1 + $0x70] sm:$0xff]   ;;  %v411_v21 = vmov 0.0   ;;  %vm412_vm0 = vmmov 0   ;;  %v211_v33 = vlaneseq }
  0x14   :  { %v380_v16 = vld [vmem:[%s521_s1 + $0x30] sm:$0xff]   ;;  %v381_v17 = vld [vmem:[%s521_s1 + $0x78] sm:$0xff]   ;;  %v24_v19 = vld [vmem:[%s520_s0] sm:$0xff]  ;;  %357 = vmatprep.subr.mxu1 %v411_v21  ;;  %359 = vmatprep.mubr.msk.f32.mxu1 %vm412_vm0, %v411_v21  ;;  %v413_v23 = vmov 0   ;;  %vm215_vm1 = vcmask 408576   ;;  %vm298_vm2 = vcmask 57344  }
  0x15   :  { %342 = vmatpush3.bf16.msra.mxu0 %v376_v10  ;;  %195 = vmatprep.mubr.bf16.mxu0 %v27_v13  ;;  %v382_v18 = vld [vmem:[%s521_s1 + $0x38] sm:$0xff]   ;;  %v26_v20 = vpack.c.bf16 %v24_v19, %v24_v19  ;;  %v205_v22 = vld [vmem:[#allocation2] sm:$0x1]  ;;  %v212_v34 = vshrl.u32 %v211_v33, 7 }
  0x16   :  { %343 = vmatprep.subr.bf16.mxu0 %v377_v11  ;;  %366 = vset.pattern.permute.xlu0 %v413_v23  ;;  %v314_v25 = vld [vmem:[%s522_s2] ss:$0 sm:$0xff]  ;;  %s414_s2 = smov [#allocation3]  }
  0x17   :  { %208 = vperm.xlu0 %366, %v205_v22   ;;  %v204_v32 = vld [vmem:[%s523_s3] sm:$0x1]  ;;  %v213_v35 = vsub.s32 0, %v212_v34  ;;  %s306_s6 = sshll.u32 %s414_s2, 4  ;;  %s307_s6 = int_to_ptr.vmem [resolvable:$true] %s306_s6 }
  0x18   :  { %s387_s3 = scalar_lea.vmem %s307_s6, 16  ;;  %s391_s7 = scalar_lea.vmem %s307_s6, 32 }
  0x19   :  { %344 = vmatpush3.bf16.msra.mxu0 %v378_v14  ;;  %p388_p0 = scmp.ne.s32.totalorder %s307_s6, %s387_s3  ;;  %p392_p1 = scmp.lt.s32.totalorder %s307_s6, %s307_s6 }
  0x1a   :  { %345 = vmatprep.subr.bf16.mxu0 %v379_v15  ;;  %p393_p2 = scmp.lt.s32.totalorder %s391_s7, %s387_s3 }
  0x1c   :  { %p394_p3 = por %p393_p2, %p392_p1 }
  0x1d   :  { %346 = vmatpush3.bf16.msra.mxu0 %v380_v16 }
  0x1e   :  { %347 = vmatprep.subr.bf16.mxu0 %v381_v17  ;;  %p395_p4 = pnand %p394_p3, %p388_p0 }
  0x21   :  { %348 = vmatpush3.bf16.msra.mxu0 %v382_v18 }
  0x24   :  { %196 = vmatmul.mubr.bf16.vlgmr.msra.gmra.mrb[0].mxu0 %v26_v20 }
  0x96   :  { %v209_v36 = vpop.permute.xlu0 %208 }
  0x97   :  { %v214_v37 = vrot.slane %v209_v36, %v213_v35 }
  0xf7   :  { %v349_v24 = vpop.f32.mrb[0].mxu0 }
  0xf8   :  { %v350_v26 = vpop.f32.mrb[1].mxu0 }
  0xf9   :  { %v351_v27 = vadd.f32 %v350_v26, %v349_v24  ;;  %v352_v28 = vpop.f32.mrb[2].mxu0 }
  0xfa   :  { %v353_v29 = vpop.f32.mrb[3].mxu0 }
  0xfb   :  { %v198_v30 = vadd.f32 %v351_v27, %v314_v25 }
  0xfd   :  { %v203_v31 = vmax.f32 %v198_v30, 0.0 }
  0xff   :  { %358 = vmatpush3.xpose.msk.msra.mxu1 %vm215_vm1, %v203_v31 }
 0x102   :  { %360 = vmatmul.mubr.msk.f32.vlgmr.msra.gmra.mrb[0].mxu1 %vm215_vm1, %v204_v32 }
 0x1d5   :  { %v288_v38 = vpop.f32.mrb[0].mxu1 }
 0x1d6   :  { %v289_v39 = vadd.f32 %v288_v38, %v214_v37  ;;  %v361_v40 = vpop.f32.mrb[1].mxu1 }
 0x1d8   :  { %v292_v41 = vsub.f32 0.0, %v289_v39 }
 0x1da   :  { %v293_v42 = vmul.f32 1.442695, %v292_v41 }
 0x1dc   :  { %383 = vpow2.f32 %v293_v42 }
 0x1e6   :  { %v384_v43 = vpop.eup %383 }
 0x1e7   :  { %v295_v44 = vadd.f32 1.0, %v384_v43 }
 0x1e9   :  { %385 = vrcp.f32 %v295_v44 }
 0x1f3   :  { %v386_v45 = vpop.eup %385 }
 0x1f4   :  { %299 = vst.msk [vmem:[#allocation3] sm:$0x1] %vm298_vm2, %v386_v45 }
 0x1f5   :  { %398 = shalt.err (!%p395_p4)
}
 0x1f6   :  { %s399_s10 = scalar_lea.hbm %s525_s5, 16 }
 0x1f7   :  { %p400_p5 = scmp.ne.s32.totalorder %s525_s5, %s399_s10  ;;  %p403_p6 = scmp.lt.u32.totalorder %s399_s10, %s525_s5 }
 0x1f9   :  { %p405_p7 = pnand %p403_p6, %p400_p5 }
 0x1fb   :  { %408 = shalt.err (!%p405_p7)
}
 0x1fc   :  { %309 = dma.vmem_to_hbm [thread:$0]  %s307_s6, 16, %s525_s5, [#allocation4]  }
 0x1fd   :  { %409 = dma.done.wait [#allocation4], 16  }
 0x1fe   :  { %410 = vsyncadd [#allocation4], 4294967280 }
 0x1ff   :  { %313 = vsyncpa [#allocation4], 1 }

</bundles_post_ra>
